<compile_context>
chip_gen: v7x
topology: tpu7x:2x2x1
jax: 0.10.0
libtpu: 0.0.40
codegen_flags: <defaults>
</compile_context>

<pallas_src>
import jax
import jax.numpy as jnp
from jax.experimental import pallas as pl
from jax.experimental.pallas import tpu as pltpu


def neural_lap_kernel(s_ref, p_ref, w0_ref, w1_ref, w2_ref, wc_ref, bc_ref,
                      o_ref):
    # s_ref:  (Bt, 1, L)       flattened scores, L = N1*N2 on lanes
    # p_ref:  (L, L)           propagation operator (symmetric, 1/denom folded)
    # w0_ref: (D, 1)           lap_msg_0 weight (out, in) — in = 1
    # w1_ref: (Bt*D, Bt*D)     block-diag lap_msg_1 weight
    # w2_ref: (Bt*D, Bt*D)     block-diag lap_msg_2 weight
    # wc_ref: (Bt, Bt*D)       block-diag classifier weight
    # bc_ref: (1, 1)  [SMEM]   classifier bias
    # o_ref:  (Bt, 1, L)
    bt = s_ref.shape[0]
    L = s_ref.shape[2]
    d = w0_ref.shape[0]

    P = p_ref[...]                                    # (L, L)
    s_all = s_ref[...]                                # (Bt, 1, L)

    # Layer 0: Linear(1 -> D, no bias) is an outer product with w0.
    # msg0[b*D + e, n] = w0[e, 0] * s[b, 0, n]
    msg0 = (w0_ref[...][None, :, :] * s_all).reshape(bt * d, L)   # (Bt*D, L)

    def propagate(m_flat):                            # (Bt*D, L) @ (L, L)
        return jnp.dot(m_flat, P, preferred_element_type=jnp.float32)

    emb = propagate(msg0)                             # (Bt*D, L)

    # Layers 1..2: block-diagonal Linear(D -> D, no bias) then propagate.
    for w_ref in (w1_ref, w2_ref):
        msg = jnp.dot(w_ref[...], emb, preferred_element_type=jnp.float32)
        emb = propagate(msg)

    # Classifier: Linear(D -> 1) + Sigmoid, lane-dense (Bt, L) result.
    logits = jnp.dot(wc_ref[...], emb, preferred_element_type=jnp.float32)
    logits = logits + bc_ref[0, 0]
    o_ref[...] = jax.nn.sigmoid(logits).reshape(bt, 1, L).astype(o_ref.dtype)


def neural_lap_pallas(s, w0, w1, w2, wc, bc, *, batch_per_step=1):
    """s: (B, N1, N2); weights in PyTorch (out, in) orientation; bc: (1, 1)."""
    B, N1, N2 = s.shape
    assert N2 >= N1, "module asserts s.shape[2] >= s.shape[1]"
    L = N1 * N2
    D = w0.shape[0]
    Bt = batch_per_step
    assert B % Bt == 0, "batch_per_step must divide the batch size"
    denom = float(N1 + N2 - 2)

    # Propagation operator on the flattened (N1*N2) axis:
    #   P[n', n] = ([q'==q] + [p'==p] - 2*[n'==n]) / denom,  n = p*N2 + q
    idx = jnp.arange(L)
    row_id = idx // N2
    col_id = idx % N2
    same_col = (col_id[:, None] == col_id[None, :]).astype(jnp.float32)
    same_row = (row_id[:, None] == row_id[None, :]).astype(jnp.float32)
    P = (same_col + same_row - 2.0 * jnp.eye(L, dtype=jnp.float32)) * (1.0 / denom)

    # Block-diagonal weights so a fused batch tile is a single matmul.
    eye_bt = jnp.eye(Bt, dtype=jnp.float32)
    w1bd = jnp.kron(eye_bt, w1)                       # (Bt*D, Bt*D)
    w2bd = jnp.kron(eye_bt, w2)                       # (Bt*D, Bt*D)
    wcbd = jnp.kron(eye_bt, wc)                       # (Bt, Bt*D)

    s3 = s.reshape(B, 1, L)

    out = pl.pallas_call(
        neural_lap_kernel,
        out_shape=jax.ShapeDtypeStruct((B, 1, L), jnp.float32),
        grid=(B // Bt,),
        in_specs=[
            pl.BlockSpec((Bt, 1, L), lambda g: (g, 0, 0)),
            pl.BlockSpec((L, L), lambda g: (0, 0)),
            pl.BlockSpec((D, 1), lambda g: (0, 0)),
            pl.BlockSpec((Bt * D, Bt * D), lambda g: (0, 0)),
            pl.BlockSpec((Bt * D, Bt * D), lambda g: (0, 0)),
            pl.BlockSpec((Bt, Bt * D), lambda g: (0, 0)),
            pl.BlockSpec(memory_space=pltpu.MemorySpace.SMEM),
        ],
        out_specs=pl.BlockSpec((Bt, 1, L), lambda g: (g, 0, 0)),
        compiler_params=pltpu.CompilerParams(
            dimension_semantics=("parallel",)),
    )(s3, P, w0, w1bd, w2bd, wcbd, bc)
    return out.reshape(B, N1, N2)


def neural_lap_reference(s, w0, w1, w2, wc, bc):
    """Pure-JAX reference mirroring the PyTorch forward (weights (out, in))."""
    n1, n2 = s.shape[1], s.shape[2]
    denom = float(n1 + n2 - 2)

    def prop(msg):
        return (msg.sum(1, keepdims=True) + msg.sum(2, keepdims=True)
                - 2.0 * msg) / denom

    emb = prop(s[..., None] * w0[:, 0])               # (B, n1, n2, D)
    for w in (w1, w2):
        emb = prop(jnp.einsum('bnmd,ed->bnme', emb, w))
    logits = jnp.einsum('bnmd,d->bnm', emb, wc[0]) + bc[0, 0]
    return jax.nn.sigmoid(logits)


if __name__ == "__main__":
    net_dim = 16          # lap_dim / D
    B, N1, N2 = 2, 8, 16  # N2 >= N1 (as asserted by the module); N1*N2 = 128

    key = jax.random.PRNGKey(0)
    ks, k0, k1, k2, kc, kb = jax.random.split(key, 6)

    s = jax.random.normal(ks, (B, N1, N2), dtype=jnp.float32)

    # Deterministic synthetic parameters, PyTorch (out, in) orientation with
    # PyTorch-like uniform init scale.
    bound0 = 1.0                                   # in_features = 1
    bound = 1.0 / jnp.sqrt(jnp.float32(net_dim))
    w0 = jax.random.uniform(k0, (net_dim, 1), jnp.float32, -bound0, bound0)
    w1 = jax.random.uniform(k1, (net_dim, net_dim), jnp.float32, -bound, bound)
    w2 = jax.random.uniform(k2, (net_dim, net_dim), jnp.float32, -bound, bound)
    wc = jax.random.uniform(kc, (1, net_dim), jnp.float32, -bound, bound)
    bc = jax.random.uniform(kb, (1, 1), jnp.float32, -bound, bound)

    ref = neural_lap_reference(s, w0, w1, w2, wc, bc)

    # v7x-friendly variant: 2-way parallel grid, one batch element per core.
    out_par = neural_lap_pallas(s, w0, w1, w2, wc, bc, batch_per_step=1)
    out_par = jax.block_until_ready(out_par)
    assert out_par.shape == (B, N1, N2)
    assert jnp.allclose(out_par, ref, atol=1e-5, rtol=1e-5), (
        f"max abs err (Bt=1) = {jnp.max(jnp.abs(out_par - ref))}")

    # v5e/v6e-friendly variant: whole batch fused into one grid step.
    out_fused = neural_lap_pallas(s, w0, w1, w2, wc, bc, batch_per_step=B)
    out_fused = jax.block_until_ready(out_fused)
    assert out_fused.shape == (B, N1, N2)
    assert jnp.allclose(out_fused, ref, atol=1e-5, rtol=1e-5), (
        f"max abs err (Bt=B) = {jnp.max(jnp.abs(out_fused - ref))}")

    print("KERNEL_OK")
</pallas_src>

<mosaic_0001>
module attributes {stable_mosaic.version = 11 : i64} {
  func.func @neural_lap_kernel(%arg0: i32, %arg1: memref<1x1x128xf32, #tpu.memory_space<vmem>>, %arg2: memref<128x128xf32, #tpu.memory_space<vmem>>, %arg3: memref<16x1xf32, #tpu.memory_space<vmem>>, %arg4: memref<16x16xf32, #tpu.memory_space<vmem>>, %arg5: memref<16x16xf32, #tpu.memory_space<vmem>>, %arg6: memref<1x16xf32, #tpu.memory_space<vmem>>, %arg7: memref<1x1xf32, #tpu.memory_space<smem>>, %arg8: memref<1x1x128xf32, #tpu.memory_space<vmem>>) attributes {dimension_semantics = [#tpu.dimension_semantics<parallel>], iteration_bounds = array<i64: 2>, scalar_prefetch = 0 : i64, scratch_operands = 0 : i64, tpu.core_type = #tpu.core_type<tc>, window_params = [{transform_indices = @transform_0, window_bounds = array<i64: 1, 1, 128>}, {pipeline_mode = #tpu.pipeline_mode<synchronous>, transform_indices = @transform_1, window_bounds = array<i64: 128, 128>}, {pipeline_mode = #tpu.pipeline_mode<synchronous>, transform_indices = @transform_2, window_bounds = array<i64: 16, 1>}, {pipeline_mode = #tpu.pipeline_mode<synchronous>, transform_indices = @transform_3, window_bounds = array<i64: 16, 16>}, {pipeline_mode = #tpu.pipeline_mode<synchronous>, transform_indices = @transform_4, window_bounds = array<i64: 16, 16>}, {pipeline_mode = #tpu.pipeline_mode<synchronous>, transform_indices = @transform_5, window_bounds = array<i64: 1, 16>}, {transform_indices = @transform_6, window_bounds = array<i64: 1, 1>}, {transform_indices = @transform_7, window_bounds = array<i64: 1, 1, 128>}]} {
    %c0 = arith.constant 0 : index
    %c0_0 = arith.constant 0 : index
    %0 = vector.load %arg2[%c0, %c0_0] : memref<128x128xf32, #tpu.memory_space<vmem>>, vector<128x128xf32>
    %c0_1 = arith.constant 0 : index
    %c0_2 = arith.constant 0 : index
    %c0_3 = arith.constant 0 : index
    %1 = vector.load %arg1[%c0_1, %c0_2, %c0_3] : memref<1x1x128xf32, #tpu.memory_space<vmem>>, vector<1x1x128xf32>
    %c0_4 = arith.constant 0 : index
    %c0_5 = arith.constant 0 : index
    %2 = vector.load %arg3[%c0_4, %c0_5] : memref<16x1xf32, #tpu.memory_space<vmem>>, vector<16x1xf32>
    %3 = vector.shape_cast %2 : vector<16x1xf32> to vector<1x16x1xf32>
    %4 = vector.broadcast %3 : vector<1x16x1xf32> to vector<1x16x128xf32>
    %5 = vector.broadcast %1 : vector<1x1x128xf32> to vector<1x16x128xf32>
    %6 = arith.mulf %4, %5 : vector<1x16x128xf32>
    %7 = vector.shape_cast %6 : vector<1x16x128xf32> to vector<16x128xf32>
    %cst = arith.constant dense<0.000000e+00> : vector<16x128xf32>
    %8 = tpu.matmul %7, %0, %cst {dimension_numbers = #tpu.dot_dimension_numbers<[1], [0], [0], [1], [0, 0, 1, 1], [], []>} : vector<16x128xf32>, vector<128x128xf32>, vector<16x128xf32> -> vector<16x128xf32>
    %c0_6 = arith.constant 0 : index
    %c0_7 = arith.constant 0 : index
    %9 = vector.load %arg4[%c0_6, %c0_7] : memref<16x16xf32, #tpu.memory_space<vmem>>, vector<16x16xf32>
    %cst_8 = arith.constant dense<0.000000e+00> : vector<16x128xf32>
    %10 = tpu.matmul %9, %8, %cst_8 {dimension_numbers = #tpu.dot_dimension_numbers<[1], [0], [0], [1], [0, 0, 1, 1], [], []>} : vector<16x16xf32>, vector<16x128xf32>, vector<16x128xf32> -> vector<16x128xf32>
    %cst_9 = arith.constant dense<0.000000e+00> : vector<16x128xf32>
    %11 = tpu.matmul %10, %0, %cst_9 {dimension_numbers = #tpu.dot_dimension_numbers<[1], [0], [0], [1], [0, 0, 1, 1], [], []>} : vector<16x128xf32>, vector<128x128xf32>, vector<16x128xf32> -> vector<16x128xf32>
    %c0_10 = arith.constant 0 : index
    %c0_11 = arith.constant 0 : index
    %12 = vector.load %arg5[%c0_10, %c0_11] : memref<16x16xf32, #tpu.memory_space<vmem>>, vector<16x16xf32>
    %cst_12 = arith.constant dense<0.000000e+00> : vector<16x128xf32>
    %13 = tpu.matmul %12, %11, %cst_12 {dimension_numbers = #tpu.dot_dimension_numbers<[1], [0], [0], [1], [0, 0, 1, 1], [], []>} : vector<16x16xf32>, vector<16x128xf32>, vector<16x128xf32> -> vector<16x128xf32>
    %cst_13 = arith.constant dense<0.000000e+00> : vector<16x128xf32>
    %14 = tpu.matmul %13, %0, %cst_13 {dimension_numbers = #tpu.dot_dimension_numbers<[1], [0], [0], [1], [0, 0, 1, 1], [], []>} : vector<16x128xf32>, vector<128x128xf32>, vector<16x128xf32> -> vector<16x128xf32>
    %c0_14 = arith.constant 0 : index
    %c0_15 = arith.constant 0 : index
    %15 = vector.load %arg6[%c0_14, %c0_15] : memref<1x16xf32, #tpu.memory_space<vmem>>, vector<1x16xf32>
    %cst_16 = arith.constant dense<0.000000e+00> : vector<1x128xf32>
    %16 = tpu.matmul %15, %14, %cst_16 {dimension_numbers = #tpu.dot_dimension_numbers<[1], [0], [0], [1], [0, 0, 1, 1], [], []>} : vector<1x16xf32>, vector<16x128xf32>, vector<1x128xf32> -> vector<1x128xf32>
    %c0_17 = arith.constant 0 : index
    %c0_18 = arith.constant 0 : index
    %17 = memref.load %arg7[%c0_17, %c0_18] : memref<1x1xf32, #tpu.memory_space<smem>>
    %18 = vector.broadcast %17 : f32 to vector<1x128xf32>
    %19 = arith.addf %16, %18 : vector<1x128xf32>
    %20 = arith.negf %19 : vector<1x128xf32>
    %21 = math.exp %20 : vector<1x128xf32>
    %cst_19 = arith.constant 1.000000e+00 : f32
    %22 = vector.broadcast %cst_19 : f32 to vector<1x128xf32>
    %23 = arith.addf %22, %21 : vector<1x128xf32>
    %24 = arith.divf %22, %23 : vector<1x128xf32>
    %25 = vector.shape_cast %24 : vector<1x128xf32> to vector<1x1x128xf32>
    %c0_20 = arith.constant 0 : index
    %c0_21 = arith.constant 0 : index
    %c0_22 = arith.constant 0 : index
    %26 = vector.load %arg8[%c0_20, %c0_21, %c0_22] : memref<1x1x128xf32, #tpu.memory_space<vmem>>, vector<1x1x128xf32>
    tpu.vector_store %arg8[%c0_20, %c0_21, %c0_22], %25 {strides = array<i32>} : memref<1x1x128xf32, #tpu.memory_space<vmem>>, vector<1x1x128xf32>,
    return
  }
  func.func @transform_0(%arg0: i32) -> (i32, i32, i32) {
    %c0_i32 = arith.constant 0 : i32
    %c0_i32_0 = arith.constant 0 : i32
    %c0_i32_1 = arith.constant 0 : i32
    return %arg0, %c0_i32, %c0_i32_0 : i32, i32, i32
  }
  func.func @transform_1(%arg0: i32) -> (i32, i32) {
    %c0_i32 = arith.constant 0 : i32
    %c0_i32_0 = arith.constant 0 : i32
    %c0_i32_1 = arith.constant 0 : i32
    return %c0_i32, %c0_i32_0 : i32, i32
  }
  func.func @transform_2(%arg0: i32) -> (i32, i32) {
    %c0_i32 = arith.constant 0 : i32
    %c0_i32_0 = arith.constant 0 : i32
    %c0_i32_1 = arith.constant 0 : i32
    return %c0_i32, %c0_i32_0 : i32, i32
  }
  func.func @transform_3(%arg0: i32) -> (i32, i32) {
    %c0_i32 = arith.constant 0 : i32
    %c0_i32_0 = arith.constant 0 : i32
    %c0_i32_1 = arith.constant 0 : i32
    return %c0_i32, %c0_i32_0 : i32, i32
  }
  func.func @transform_4(%arg0: i32) -> (i32, i32) {
    %c0_i32 = arith.constant 0 : i32
    %c0_i32_0 = arith.constant 0 : i32
    %c0_i32_1 = arith.constant 0 : i32
    return %c0_i32, %c0_i32_0 : i32, i32
  }
  func.func @transform_5(%arg0: i32) -> (i32, i32) {
    %c0_i32 = arith.constant 0 : i32
    %c0_i32_0 = arith.constant 0 : i32
    %c0_i32_1 = arith.constant 0 : i32
    return %c0_i32, %c0_i32_0 : i32, i32
  }
  func.func @transform_6(%arg0: i32) -> (i32, i32) {
    %c0_i32 = arith.constant 0 : i32
    %c0_i32_0 = arith.constant 0 : i32
    %c0_i32_1 = arith.constant 0 : i32
    return %c0_i32, %c0_i32_0 : i32, i32
  }
  func.func @transform_7(%arg0: i32) -> (i32, i32, i32) {
    %c0_i32 = arith.constant 0 : i32
    %c0_i32_0 = arith.constant 0 : i32
    %c0_i32_1 = arith.constant 0 : i32
    return %arg0, %c0_i32, %c0_i32_0 : i32, i32, i32
  }
}

</mosaic_0001>

<bundles_post_ra>
// kernel: tpu_custom_call.1
= control target key start
LH: loop header
LB: loop body
LE: loop exit
PB: predicated region body
PF: predicated region fallthrough
CT: control target
= control target key end

     0   :  { %s1726_s0 = inlined_call_operand.hbm [shape: f32[2,1,128], index: 0, kind: input, shape index: {}]   ;;  %s1727_s1 = inlined_call_operand.hbm [shape: f32[128,128], index: 1, kind: input, shape index: {}]   ;;  %s1728_s2 = inlined_call_operand.vmem [shape: f32[16,1], index: 2, kind: input, shape index: {}]   ;;  %s1729_s3 = inlined_call_operand.vmem [shape: f32[16,16], index: 3, kind: input, shape index: {}]   ;;  %s1730_s4 = inlined_call_operand.vmem [shape: f32[16,16], index: 4, kind: input, shape index: {}]   ;;  %s1731_s5 = inlined_call_operand.vmem [shape: f32[1,16], index: 5, kind: input, shape index: {}]   ;;  %s1732_s6 = inlined_call_operand.<no memory space> [shape: f32[1,1], index: 6, kind: input, shape index: {}]   ;;  %s1733_s7 = inlined_call_operand.hbm [shape: f32[2,1,128], index: 7, kind: output, shape index: {}]  }
   0x1   :  { %12 = sst [smem:[#allocation2]] %s1732_s6 }
   0x2   :  { %13 = vsyncpa [#allocation4], 0 }
   0x3   :  { %15 = vsyncpa [#allocation4 + $0x1], 0 }
   0x4   :  { %16 = vsyncpa [#allocation7], 0 }
   0x5   :  { %17 = vsyncpa [#allocation5], 0 }
   0x6   :  { %19 = vsyncpa [#allocation5 + $0x1], 0  ;;  %s1469_s26 = smov 0   ;;  %s1471_s27 = smov 0  }
   0x7   :  { %s1473_s28 = smov 0   ;;  %s1475_s29 = smov 0  }
   0x8 LB: > { %s1490_s6 = sadd.s32 4294967295, %s1415_s29   ;;  %s904_s30 = sadd.s32 4294967294, %s1415_s29   ;;  %s1415_s29 = sphi %s1475_s29, %s1753_s29   ;;  %s1411_s28 = sphi %s1473_s28, %s1752_s28   ;;  %s1407_s27 = sphi %s1471_s27, %s1751_s27   ;;  %s1403_s26 = sphi %s1469_s26, %s1750_s26  }
   0x9   : > { %p45_p0 = scmp.ne.s32.totalorder %s1407_s27, %s1403_s26  ;;  %p1734_p1 = scmp.eq.s32.totalorder %s1490_s6, 0 }
   0xa   : > { %p201_p3 = scmp.eq.s32.totalorder %s904_s30, 1  ;;  %p905_p5 = scmp.ge.s32.totalorder %s1415_s29, 1 }
   0xb   : > { %p1499_p4 = por %p1734_p1, %p45_p0  ;;  %p208_p7 = scmp.lt.s32.totalorder %s1415_s29, 3 }
   0xc   : > { %p1504_p6 = por %p201_p3, %p45_p0  ;;  %s1417_s11 = smov [#allocation6]  }
   0xd   : > { %s1737_s8 = scalar_select %p1499_p4, 1, 0 }
   0xe   : > { %s1738_s9 = scalar_select %p1504_p6, 1, 0 }
   0xf   : > { %p1509_p8 = pnand %p905_p5, %p208_p7  ;;  %s220_s12 = sshll.u32 %s1417_s11, 4  ;;  %s1513_s12 = int_to_ptr.vmem [resolvable:$true] %s220_s12 }
  0x10   : > { %s1525_s14 = sadd.s32 1, %s1415_s29   ;;  %s32_s15 = sadd.s32 1, %s1411_s28 }
  0x11   : > { %s1739_s10 = scalar_select %p1509_p8, 1, 0 }
  0x12   : > { %p1227_p9 = pneg %p1509_p8  ;;  %s29_s16 = ssub.s32 %s1415_s29, %s1525_s14 }
  0x13   : > { %s1287_s19 = scalar_lea.hbm %s1727_s1, 2048 }
  0x14   : > { %p1520_p11 = pnand %p1227_p9, %p1734_p1  ;;  %p1288_p12 = scmp.ne.s32.totalorder %s1727_s1, %s1287_s19 }
  0x15   : > { %p1294_p5 = scmp.lt.u32.totalorder %s1287_s19, %s1727_s1 }
  0x16   : > { %p1289_p13 = pneg %p1520_p11 }
  0x18   : > { %p1290_p0 = pnand %p1289_p13, %p1288_p12 }
  0x1a   : > { %p1291_p3 = pneg %p1290_p0 }
  0x1c   : > { %p1296_p7 = pnand %p1294_p5, %p1291_p3 }
  0x1e   : > { %1299 = shalt.err (!%p1296_p7)
}
  0x1f   : > { %s1300_s24 = scalar_lea.vmem %s1513_s12, 2048  ;;  %p1308_p2 = scmp.lt.s32.totalorder %s1513_s12, %s1513_s12 }
  0x20   : > { %p1301_p9 = scmp.ne.s32.totalorder %s1513_s12, %s1300_s24  ;;  %p1309_p6 = scmp.lt.s32.totalorder %s1300_s24, %s1300_s24 }
  0x22   : > { %p1303_p10 = pnand %p1301_p9, %p1289_p13  ;;  %p1310_p4 = por %p1309_p6, %p1308_p2 }
  0x24   : > { %p1304_p1 = pneg %p1303_p10 }
  0x26   : > { %p1311_p8 = pnand %p1310_p4, %p1304_p1 }
  0x28   : > { %1314 = shalt.err (!%p1311_p8)
}
  0x29   : > { %s1418_s25 = smov 128   ;;  %s1419_s30 = smov 8  }
  0x2a   : > { %1230 = dma.hbm_to_vmem [thread:$0]  (!%p1520_p11), %s1727_s1, 2048, %s1513_s12, [#allocation7], %s1418_s25, %s1418_s25, %s1419_s30  }
  0x2b   : > { %p30_p2 = scmp.eq.s32.totalorder %s29_s16, 0  ;;  %p39_p1 = scmp.ne.s32.totalorder %s1411_s28, %s1407_s27 }
  0x2c   : > { %p40_p4 = scmp.eq.s32.totalorder %s1415_s29, 0  ;;  %p1240_p6 = scmp.lt.s32.totalorder %s1415_s29, 2 }
  0x2d   : > { %s1556_s18 = scalar_select %p30_p2, %s1411_s28, %s32_s15  }
  0x2e   : > { %p41_p8 = por %p40_p4, %p39_p1  ;;  %p1741_p10 = scmp.eq.s32.totalorder %s1490_s6, 1 }
  0x2f   : > { %s249_s20 = sand.u32 1, %s1411_s28   ;;  %s908_s21 = sshll.u32 %s1415_s29, 4 }
  0x30   : > { %p1560_p12 = por %p1741_p10, %p39_p1  ;;  %s1569_s23 = scalar_lea.hbm %s1726_s0, %s908_s21 }
  0x31   : > { %s252_s12 = scalar_lea.vmem [#allocation3], %s249_s20  ;;  %p1573_p11 = pnand %p1240_p6, %p41_p8 }
  0x32   : > { %s259_s15 = sshll.u32 %s252_s12, 4  ;;  %s250_s24 = scalar_lea.sflag [#allocation4], %s249_s20  ;;  %s1571_s15 = int_to_ptr.vmem [resolvable:$true] %s259_s15 }
  0x33   : > { %s1315_s25 = scalar_lea.hbm %s1569_s23, 16  ;;  %p1317_p0 = pneg %p1573_p11 }
  0x34   : > { %p1316_p13 = scmp.ne.s32.totalorder %s1569_s23, %s1315_s25  ;;  %s1320_s17 = scalar_lea.hbm %s1726_s0, 32 }
  0x35   : > { %p1321_p7 = scmp.lt.u32.totalorder %s1569_s23, %s1726_s0  ;;  %p1322_p9 = scmp.lt.u32.totalorder %s1320_s17, %s1315_s25 }
  0x36   : > { %p1318_p3 = pnand %p1317_p0, %p1316_p13  ;;  %p1324_p1 = scmp.lt.u32.totalorder %s1315_s25, %s1569_s23 }
  0x37   : > { %p1323_p2 = por %p1322_p9, %p1321_p7 }
  0x38   : > { %p1319_p5 = pneg %p1318_p3 }
  0x39   : > { %p1325_p4 = por %p1324_p1, %p1323_p2 }
  0x3b   : > { %p1326_p6 = pnand %p1325_p4, %p1319_p5 }
  0x3d   : > { %1329 = shalt.err (!%p1326_p6)
}
  0x3e   : > { %s1330_s20 = scalar_lea.vmem %s1571_s15, 16  ;;  %s1420_s13 = smov [#allocation3]  }
  0x3f   : > { %p1331_p8 = scmp.ne.s32.totalorder %s1571_s15, %s1330_s20  ;;  %s1335_s12 = sshll.u32 %s1420_s13, 4  ;;  %s1336_s12 = int_to_ptr.vmem [resolvable:$false] %s1335_s12 }
  0x40   : > { %s1337_s30 = scalar_lea.vmem %s1336_s12, 32  ;;  %p1338_p3 = scmp.lt.s32.totalorder %s1571_s15, %s1336_s12 }
  0x41   : > { %p1333_p10 = pnand %p1331_p8, %p1317_p0  ;;  %p1339_p7 = scmp.lt.s32.totalorder %s1337_s30, %s1330_s20 }
  0x43   : > { %p1334_p13 = pneg %p1333_p10  ;;  %p1340_p9 = por %p1339_p7, %p1338_p3 }
  0x45   : > { %p1341_p2 = pnand %p1340_p9, %p1334_p13 }
  0x47   : > { %1344 = shalt.err (!%p1341_p2)
}
  0x48   : > { %1234 = dma.hbm_to_vmem [thread:$0]  (!%p1573_p11), %s1569_s23, 16, %s1571_s15, %s250_s24  }
  0x49   : > { %p1744_p5 = scmp.ne.s32.totalorder %s1739_s10, 0 }
  0x4a   : > { %s1605_s25 = sand.u32 (!%p1744_p5), 1, %s1407_s27   ;;  %p1745_p0 = scmp.ne.s32.totalorder (!%p1744_p5), %s1737_s8, 0 }
  0x4b   : > { %268 = sbr.rel (%p1744_p5) target bundleno = 1560 (0x618), region = 48  ;;  %s271_s11 = scalar_lea.sflag (!%p1744_p5), [#allocation4], %s1605_s25 }
  0x4c   : > { %s273_s17 = scalar_lea.vmem (!%p1744_p5), [#allocation3], %s1605_s25 }
  0x52   : > { %1390 = dma.done.wait (%p1745_p0), %s271_s11, 16  }
  0x53   : > { %1392 = vsyncadd (%p1745_p0), %s271_s11, 4294967280  ;;  %p1746_p1 = scmp.eq.s32.totalorder %s1490_s6, 0 }
  0x55   : > { %1394 = dma.done.wait (%p1746_p1), [#allocation7], 2048   ;;  %p1747_p11 = pmov %p1746_p1 }
  0x56   : > { %v1421_v0 = vmov 0   ;;  %v323_v1 = vld [vmem:[%s1728_s2] sm:$0xff]  ;;  %v307_v3 = vld [vmem:[#allocation6 + $0x8] sm:$0xff]  ;;  %v308_v4 = vld [vmem:[#allocation6 + $0x10] sm:$0xff]  ;;  %vm420_vm0 = vcmask 130048   ;;  %v1422_v46 = vmov 0.0|0.0  }
  0x57   : > { %1396 = vsyncadd (%p1747_p11), [#allocation7], 4294965248  ;;  %1282 = vset.pattern.permute.xlu0 %v1421_v0  ;;  %v306_v2 = vld [vmem:[#allocation6] sm:$0xff]  ;;  %v309_v5 = vld [vmem:[#allocation6 + $0x18] sm:$0xff]  ;;  %vm1423_vm1 = vmmov 0   ;;  %v1424_v47 = vmov 0.0  }
  0x58   : > { %327 = vperm.xlu0 %1282, %v323_v1   ;;  %v324_v6 = vld [vmem:[%s1728_s2 + $0x8] sm:$0xff]  ;;  %v1623_v7 = vpack.c.bf16 %v307_v3, %v306_v2  ;;  %v1625_v8 = vpack.c.bf16 %v309_v5, %v308_v4  ;;  %v312_v12 = vld [vmem:[#allocation6 + $0x30] sm:$0xff]  ;;  %v313_v13 = vld [vmem:[#allocation6 + $0x38] sm:$0xff]  ;;  %s736_s10 = sld [smem:[#allocation2]]  ;;  %s918_s23 = sshll.u32 %s1490_s6, 4 }
  0x59   : > { %v310_v9 = vld [vmem:[#allocation6 + $0x20] sm:$0xff]  ;;  %v311_v10 = vld [vmem:[#allocation6 + $0x28] sm:$0xff]  ;;  %v1634_v14 = vpack.c.bf16 %v313_v13, %v312_v12  ;;  %v316_v18 = vld [vmem:[#allocation6 + $0x50] sm:$0xff]  ;;  %s305_s15 = scalar_lea.vmem [#allocation8], %s1605_s25  ;;  %s1682_s21 = scalar_lea.hbm %s1733_s7, %s918_s23 }
  0x5a   : > { %1113 = vmatprep.subr.bf16.mxu0 %v1623_v7  ;;  %v1630_v11 = vpack.c.bf16 %v311_v10, %v310_v9  ;;  %v314_v15 = vld [vmem:[#allocation6 + $0x40] sm:$0xff]  ;;  %v315_v16 = vld [vmem:[#allocation6 + $0x48] sm:$0xff]  ;;  %v317_v19 = vld [vmem:[#allocation6 + $0x58] sm:$0xff]  ;;  %s831_s8 = sshll.u32 %s305_s15, 4  ;;  %s819_s22 = scalar_lea.sflag [#allocation5], %s1605_s25  ;;  %s1684_s8 = int_to_ptr.vmem [resolvable:$true] %s831_s8 }
  0x5b   : > { %1115 = vmatpush3.bf16.msra.mxu0 %v1623_v7  ;;  %v1128_v17 = vpack.c.bf16 %v315_v16, %v314_v15  ;;  %v1132_v20 = vpack.c.bf16 %v317_v19, %v316_v18  ;;  %v318_v21 = vld [vmem:[#allocation6 + $0x60] sm:$0xff]  ;;  %v319_v22 = vld [vmem:[#allocation6 + $0x68] sm:$0xff]  ;;  %v320_v24 = vld [vmem:[#allocation6 + $0x70] sm:$0xff]  ;;  %s1345_s20 = scalar_lea.vmem %s1684_s8, 16  ;;  %s1425_s6 = smov [#allocation8]  }
  0x5c   : > { %332 = vperm.xlu0 %1282, %v324_v6   ;;  %1117 = vmatprep.subr.bf16.mxu0 %v1625_v8  ;;  %v1136_v23 = vpack.c.bf16 %v319_v22, %v318_v21  ;;  %v321_v25 = vld [vmem:[#allocation6 + $0x78] sm:$0xff]  ;;  %v419_v36 = vld [vmem:[%s1729_s3 + $0x8] sm:$0xff]  ;;  %p1346_p4 = scmp.ne.s32.totalorder %s1684_s8, %s1345_s20  ;;  %s1349_s13 = sshll.u32 %s1425_s6, 4  ;;  %s1350_s13 = int_to_ptr.vmem [resolvable:$false] %s1349_s13 }
  0x5d   : > { %v1140_v26 = vpack.c.bf16 %v321_v25, %v320_v24  ;;  %v911_v27 = vld [vmem:[%s273_s17] ss:$0 sm:$0xff]  ;;  %v578_v43 = vld [vmem:[%s1730_s4 + $0x8] sm:$0xff]  ;;  %s1351_s12 = scalar_lea.vmem %s1350_s13, 32  ;;  %p1352_p10 = scmp.lt.s32.totalorder %s1684_s8, %s1350_s13 }
  0x5e   : > { %v418_v32 = vld [vmem:[%s1729_s3] sm:$0xff]  ;;  %v737_v52 = vstv %s736_s10  ;;  %p1347_p6 = pnand %p1346_p4, %p1560_p12  ;;  %p1353_p13 = scmp.lt.s32.totalorder %s1351_s12, %s1345_s20 }
  0x5f   : > { %1119 = vmatpush3.bf16.msra.mxu0 %v1625_v8  ;;  %1025 = vmatprep.mubr.msk.f32.mxu1 %vm420_vm0, %v418_v32  ;;  %v577_v39 = vld [vmem:[%s1730_s4] sm:$0xff] }
  0x60   : > { %1121 = vmatprep.subr.bf16.mxu0 %v1630_v11  ;;  %v735_v51 = vld [vmem:[%s1731_s5] sm:$0x1]  ;;  %p1348_p8 = pneg %p1347_p6  ;;  %p1354_p3 = por %p1353_p13, %p1352_p10 }
  0x62   : > { %p1355_p7 = pnand %p1354_p3, %p1348_p8 }
  0x63   : > { %1123 = vmatpush3.bf16.msra.mxu0 %v1630_v11 }
  0x64   : > { %1125 = vmatprep.subr.bf16.mxu0 %v1634_v14 }
  0x67   : > { %1127 = vmatpush3.bf16.msra.mxu0 %v1634_v14 }
  0x68   : > { %1129 = vmatprep.subr.bf16.mxu0 %v1128_v17 }
  0x6b   : > { %1131 = vmatpush3.bf16.msra.mxu0 %v1128_v17 }
  0x6c   : > { %1133 = vmatprep.subr.bf16.mxu0 %v1132_v20 }
  0x6f   : > { %1135 = vmatpush3.bf16.msra.mxu0 %v1132_v20 }
  0x70   : > { %1137 = vmatprep.subr.bf16.mxu0 %v1136_v23 }
  0x73   : > { %1139 = vmatpush3.bf16.msra.mxu0 %v1136_v23 }
  0x74   : > { %1141 = vmatprep.subr.bf16.mxu0 %v1140_v26 }
  0x77   : > { %1143 = vmatpush3.bf16.msra.mxu0 %v1140_v26 }
  0x78   : > { %1185 = vmatprep.subr.bf16.mxu0 %v1623_v7 }
  0xd7   : > { %v328_v28 = vpop.permute.xlu0 %327 }
  0xd8   : > { %v341_v29 = vmul.f32 %v911_v27, %v328_v28 }
  0xda   : > { %1018 = vmatprep.mubr.f32.mxu0 %v341_v29 }
  0xdb   : > { %v333_v30 = vpop.permute.xlu0 %332 }
  0xdc   : > { %v342_v31 = vmul.f32 %v911_v27, %v333_v30 }
  0xde   : > { %1019 = vmatmul.mubr.f32.vlgmr.msra.gmra.mrb[0].mxu0 %v342_v31 }
  0xdf   : > { %1187 = vmatpush3.bf16.msra.mxu0 %v1623_v7 }
  0xe0   : > { %1189 = vmatprep.subr.bf16.mxu0 %v1625_v8 }
  0xe3   : > { %1191 = vmatpush3.bf16.msra.mxu0 %v1625_v8 }
  0xe4   : > { %1193 = vmatprep.subr.bf16.mxu0 %v1630_v11 }
  0xe7   : > { %1195 = vmatpush3.bf16.msra.mxu0 %v1630_v11 }
  0xe8   : > { %1197 = vmatprep.subr.bf16.mxu0 %v1634_v14 }
  0xeb   : > { %1199 = vmatpush3.bf16.msra.mxu0 %v1634_v14 }
  0xec   : > { %1201 = vmatprep.subr.bf16.mxu0 %v1128_v17 }
  0xef   : > { %1203 = vmatpush3.bf16.msra.mxu0 %v1128_v17 }
  0xf0   : > { %1205 = vmatprep.subr.bf16.mxu0 %v1132_v20 }
  0xf3   : > { %1207 = vmatpush3.bf16.msra.mxu0 %v1132_v20 }
  0xf4   : > { %1209 = vmatprep.subr.bf16.mxu0 %v1136_v23 }
  0xf7   : > { %1211 = vmatpush3.bf16.msra.mxu0 %v1136_v23 }
  0xf8   : > { %1213 = vmatprep.subr.bf16.mxu0 %v1140_v26 }
  0xfb   : > { %1215 = vmatpush3.bf16.msra.mxu0 %v1140_v26 }
 0x1b1   : > { %v1020_v33 = vpop.f32.mrb[0].mxu0 }
 0x1b2   : > { %v409_v34 = vpop.f32.mrb[1].mxu0 }
 0x1b3   : > { %v1144_v35 = vpack.c.bf16 %v1020_v33, %v409_v34 }
 0x1b5   : > { %1145 = vmatprep.subr.bf16.mxu1 %v1144_v35 }
 0x1b6   : > { %1147 = vmatpush3.bf16.msra.mxu1 %v1144_v35 }
 0x1b7   : > { %1149 = vmatprep.subr.bf16.mxu1 %v1623_v7 }
 0x1b9   : > { %1026 = vmatmul.mubr.msk.f32.vlgmr.msra.gmra.mrb[0].mxu1 %vm420_vm0, %v419_v36 }
 0x1ba   : > { %1151 = vmatpush3.bf16.msra.mxu1 %v1623_v7 }
 0x1bb   : > { %1153 = vmatprep.subr.bf16.mxu1 %v1625_v8 }
 0x1be   : > { %1155 = vmatpush3.bf16.msra.mxu1 %v1625_v8 }
 0x1bf   : > { %1157 = vmatprep.subr.bf16.mxu1 %v1630_v11 }
 0x1c2   : > { %1159 = vmatpush3.bf16.msra.mxu1 %v1630_v11 }
 0x1c3   : > { %1161 = vmatprep.subr.bf16.mxu1 %v1634_v14 }
 0x1c6   : > { %1163 = vmatpush3.bf16.msra.mxu1 %v1634_v14 }
 0x1c7   : > { %1165 = vmatprep.subr.bf16.mxu1 %v1128_v17 }
 0x1ca   : > { %1167 = vmatpush3.bf16.msra.mxu1 %v1128_v17 }
 0x1cb   : > { %1169 = vmatprep.subr.bf16.mxu1 %v1132_v20 }
 0x1ce   : > { %1171 = vmatpush3.bf16.msra.mxu1 %v1132_v20 }
 0x1cf   : > { %1173 = vmatprep.subr.bf16.mxu1 %v1136_v23 }
 0x1d2   : > { %1175 = vmatpush3.bf16.msra.mxu1 %v1136_v23 }
 0x1d3   : > { %1177 = vmatprep.subr.bf16.mxu1 %v1140_v26 }
 0x1d6   : > { %1179 = vmatpush3.bf16.msra.mxu1 %v1140_v26 }
 0x28c   : > { %v1027_v37 = vpop.f32.mrb[0].mxu1 }
 0x28d   : > { %v493_v38 = vpop.f32.mrb[1].mxu1 }
 0x28e   : > { %1060 = vmatprep.mubr.f32.mxu1 %v493_v38 }
 0x28f   : > { %1061 = vmatmul.mubr.f32.vlgmr.msra.gmra.mrb[2].mxu1 %v1027_v37 }
 0x290   : > { %1067 = vmatprep.mubr.msk.f32.mxu1 %vm420_vm0, %v577_v39 }
 0x362   : > { %v1062_v40 = vpop.f32.mrb[2].mxu1 }
 0x363   : > { %v568_v41 = vpop.f32.mrb[3].mxu1 }
 0x364   : > { %v1180_v42 = vpack.c.bf16 %v1062_v40, %v568_v41 }
 0x366   : > { %1181 = vmatprep.subr.bf16.mxu1 %v1180_v42 }
 0x367   : > { %1183 = vmatpush3.bf16.msra.mxu1 %v1180_v42 }
 0x368   : > { %1216 = vmatprep.subr.bf16.mxu1 %v1422_v46 }
 0x36a   : > { %1068 = vmatmul.mubr.msk.f32.vlgmr.msra.gmra.mrb[4].mxu1 %vm420_vm0, %v578_v43 }
 0x36b   : > { %1109 = vmatprep.mubr.msk.f32.mxu1 %vm1423_vm1, %v1424_v47 }
 0x43d   : > { %v1069_v44 = vpop.f32.mrb[4].mxu1 }
 0x43e   : > { %v651_v45 = vpop.f32.mrb[5].mxu1 }
 0x43f   : > { %1102 = vmatprep.mubr.f32.mxu0 %v651_v45 }
 0x440   : > { %1103 = vmatmul.mubr.f32.vlgmr.msra.gmra.mrb[2].mxu0 %v1069_v44 }
 0x513   : > { %v1104_v48 = vpop.f32.mrb[2].mxu0 }
 0x514   : > { %v726_v49 = vpop.f32.mrb[3].mxu0 }
 0x515   : > { %v1217_v50 = vpack.c.bf16 %v1104_v48, %v726_v49 }
 0x517   : > { %1218 = vmatpush3.bf16.msra.mxu1 %v1217_v50 }
 0x51a   : > { %1110 = vmatmul.mubr.msk.f32.vlgmr.msra.gmra.mrb[6].mxu1 %vm420_vm0, %v735_v51 }
 0x5ed   : > { %v807_v53 = vpop.f32.mrb[6].mxu1 }
 0x5ee   : > { %v808_v54 = vadd.f32 %v807_v53, %v737_v52  ;;  %v1111_v55 = vpop.f32.mrb[7].mxu1 }
 0x5f0   : > { %v917_v56 = vmul.f32 -1.442695, %v808_v54 }
 0x5f2   : > { %1283 = vpow2.f32 %v917_v56 }
 0x5fc   : > { %v1284_v57 = vpop.eup %1283 }
 0x5fd   : > { %v814_v58 = vadd.f32 1.0, %v1284_v57 }
 0x5ff   : > { %1285 = vrcp.f32 %v814_v58 }
 0x609   : > { %v1286_v59 = vpop.eup %1285 }
 0x60a   : > { %817 = vst [vmem:[%s305_s15] sm:$0x1] %v1286_v59 }
 0x60b   : > { %1358 = shalt.err (!%p1355_p7)
}
 0x60c   : > { %s1359_s25 = scalar_lea.hbm %s1682_s21, 16  ;;  %s1363_s17 = scalar_lea.hbm %s1733_s7, 32 }
 0x60d   : > { %p1360_p9 = scmp.ne.s32.totalorder %s1682_s21, %s1359_s25  ;;  %p1364_p0 = scmp.lt.u32.totalorder %s1682_s21, %s1733_s7 }
 0x60e   : > { %p1365_p1 = scmp.lt.u32.totalorder %s1363_s17, %s1359_s25  ;;  %p1367_p4 = scmp.lt.u32.totalorder %s1359_s25, %s1682_s21 }
 0x60f   : > { %p1361_p2 = pnand %p1360_p9, %p1560_p12 }
 0x610   : > { %p1366_p11 = por %p1365_p1, %p1364_p0 }
 0x611   : > { %p1362_p5 = pneg %p1361_p2 }
 0x612   : > { %p1368_p6 = por %p1367_p4, %p1366_p11 }
 0x614   : > { %p1369_p8 = pnand %p1368_p6, %p1362_p5 }
 0x616   : > { %1372 = shalt.err (!%p1369_p8)
}
 0x617   : > { %1225 = dma.vmem_to_hbm [thread:$0]  (%p1560_p12), %s1684_s8, 16, %s1682_s21, %s819_s22  }
 0x618 PF: > { %s843_s15 = sand.u32 1, %s1403_s26   ;;  %p1748_p10 = scmp.ne.s32.totalorder %s1738_s9, 0 }
 0x619   : > { %p1749_p13 = scmp.ge.s32.totalorder %s1415_s29, 2  ;;  %s844_s16 = scalar_lea.sflag [#allocation5], %s843_s15 }
 0x61b   : > { %p1236_p3 = pnand %p1749_p13, %p1748_p10 }
 0x61d   : > { %1398 = dma.done.wait (!%p1236_p3), %s844_s16, 16  }
 0x61e   : > { %1400 = vsyncadd (!%p1236_p3), %s844_s16, 4294967280  ;;  %p22_p7 = scmp.ge.s32.totalorder %s1525_s14, 4   ;;  %s1750_s26 = smov %s1407_s27 }
 0x61f   : > { %s1751_s27 = smov %s1411_s28  ;;  %s1752_s28 = smov %s1556_s18 }
 0x620   : > { %s1753_s29 = smov %s1525_s14  ;;  %24 = sbr.rel (!%p22_p7) target bundleno = 8 (0x8), region = 97 }
 0x627   :  { %848 = vsyncpa [#allocation4], 1 }
 0x628   :  { %850 = vsyncpa [#allocation4 + $0x1], 1 }
 0x629   :  { %851 = vsyncpa [#allocation7], 1 }
 0x62a   :  { %852 = vsyncpa [#allocation5], 1 }
 0x62b   :  { %854 = vsyncpa [#allocation5 + $0x1], 1 }

</bundles_post_ra>
